<compile_context>
chip_gen: v5e
topology: v5e:2x2
jax: 0.10.0
libtpu: 0.0.40
codegen_flags: <defaults>
</compile_context>

<pallas_src>
import jax
import jax.numpy as jnp
from jax.experimental import pallas as pl
from jax.experimental.pallas import tpu as pltpu

EPS = 1e-5
NEG_SLOPE = 0.2
LANE = 128
MATMUL_DTYPE = jnp.bfloat16  # MXU-native path on v6e/v7x; f32 accumulation kept.


def _leaky_relu(x):
    return jnp.where(x >= 0, x, NEG_SLOPE * x)


def _bn_train_folded(x, gamma, beta):
    """Training-mode BatchNorm1d folded to one scale/shift over the tile."""
    mean = jnp.mean(x, axis=0, keepdims=True)          # (1, H)
    m2 = jnp.mean(x * x, axis=0, keepdims=True)        # (1, H)
    var = m2 - mean * mean                             # biased batch variance
    s = gamma * jax.lax.rsqrt(var + EPS)                # (1, H)
    t = beta - mean * s                                 # (1, H)
    return x * s + t                                    # single full-tile pass


def generator_kernel(z_ref,
                     w1_ref, v1_ref,
                     w2_ref, v2_ref,
                     w3_ref, b3_ref,
                     out_ref):
    # v{1,2}_ref pack (bias, gamma, beta) as rows of one (3, H) slab -> 1 DMA/layer.
    # Layer 1: Linear -> LeakyReLU -> BN (train-mode, folded)
    h = jnp.dot(z_ref[...].astype(MATMUL_DTYPE), w1_ref[...],
                preferred_element_type=jnp.float32) + v1_ref[0:1, :]
    h = _leaky_relu(h)
    h = _bn_train_folded(h, v1_ref[1:2, :], v1_ref[2:3, :])

    # Layer 2: Linear -> LeakyReLU -> BN (train-mode, folded)
    h = jnp.dot(h.astype(MATMUL_DTYPE), w2_ref[...],
                preferred_element_type=jnp.float32) + v2_ref[0:1, :]
    h = _leaky_relu(h)
    h = _bn_train_folded(h, v2_ref[1:2, :], v2_ref[2:3, :])

    # Output layer: Linear only (lane-dense padded width, padding cols are zero).
    out_ref[...] = (jnp.dot(h.astype(MATMUL_DTYPE), w3_ref[...],
                            preferred_element_type=jnp.float32)
                    + b3_ref[...]).astype(out_ref.dtype)


def init_generator_params(key, input_dim, output_dim, hidden_dims=(256, 256),
                          matmul_dtype=MATMUL_DTYPE):
    """PyTorch-default-style init: Linear ~ U(-1/sqrt(in), 1/sqrt(in)),
    BatchNorm gamma=1, beta=0.  Weights stored (in, out); matmul weights in
    `matmul_dtype` (bf16) so the MXU gets its native operand width."""
    dims = [input_dim, hidden_dims[0], hidden_dims[1], output_dim]
    keys = jax.random.split(key, 6)
    params = {}
    for li in range(3):
        fan_in, fan_out = dims[li], dims[li + 1]
        bound = 1.0 / (float(fan_in) ** 0.5)
        w = jax.random.uniform(keys[2 * li], (fan_in, fan_out),
                               jnp.float32, -bound, bound)
        b = jax.random.uniform(keys[2 * li + 1], (1, fan_out),
                               jnp.float32, -bound, bound)
        params[f"w{li + 1}"] = w.astype(matmul_dtype)
        params[f"b{li + 1}"] = b
    for bi, h in enumerate(hidden_dims, start=1):
        params[f"g{bi}"] = jnp.ones((1, h), jnp.float32)    # BN gamma
        params[f"be{bi}"] = jnp.zeros((1, h), jnp.float32)  # BN beta
    return params


def generator_forward(z, params, output_dim):
    B = z.shape[0]
    out_pad = ((output_dim + LANE - 1) // LANE) * LANE

    # Pack per-layer (bias, gamma, beta) into one contiguous (3, H) slab each.
    v1 = jnp.concatenate([params["b1"], params["g1"], params["be1"]], axis=0)
    v2 = jnp.concatenate([params["b2"], params["g2"], params["be2"]], axis=0)

    # Lane-dense output: zero-pad the last Linear to a multiple of 128 output
    # features so the final store is an unmasked vst; slice the pad off after.
    w3, b3 = params["w3"], params["b3"]
    if out_pad != output_dim:
        w3 = jnp.pad(w3, ((0, 0), (0, out_pad - output_dim)))
        b3 = jnp.pad(b3, ((0, 0), (0, out_pad - output_dim)))

    vmem = pl.BlockSpec(memory_space=pltpu.MemorySpace.VMEM)
    args = (z, params["w1"], v1, params["w2"], v2, w3, b3)

    out = pl.pallas_call(
        generator_kernel,
        out_shape=jax.ShapeDtypeStruct((B, out_pad), jnp.float32),
        in_specs=[vmem] * len(args),
        out_specs=vmem,
        compiler_params=pltpu.CompilerParams(
            vmem_limit_bytes=32 * 1024 * 1024),
    )(*args)
    return out[:, :output_dim]


def generator_reference(z, params, matmul_dtype=MATMUL_DTYPE):
    """Pure-JAX reference (original two-pass BN formulation, same matmul dtype)."""
    def dot(x, w):
        return jnp.dot(x.astype(matmul_dtype), w.astype(matmul_dtype),
                       preferred_element_type=jnp.float32)

    def bn(x, g, b):
        mean = jnp.mean(x, axis=0, keepdims=True)
        var = jnp.mean((x - mean) * (x - mean), axis=0, keepdims=True)
        return (x - mean) * jax.lax.rsqrt(var + EPS) * g + b

    h = dot(z, params["w1"]) + params["b1"]
    h = _leaky_relu(h)
    h = bn(h, params["g1"], params["be1"])
    h = dot(h, params["w2"]) + params["b2"]
    h = _leaky_relu(h)
    h = bn(h, params["g2"], params["be2"])
    return dot(h, params["w3"]) + params["b3"]


if __name__ == "__main__":
    B = 8              # small demo batch (production batches should be >=128/256 rows)
    INPUT_DIM = 32     # latent dim
    OUTPUT_DIM = 64    # generated feature dim
    HIDDEN = (256, 256)  # matches the PyTorch module's default hidden_dims

    key = jax.random.PRNGKey(0)
    k_z, k_p = jax.random.split(key)
    z = jax.random.normal(k_z, (B, INPUT_DIM), jnp.float32)
    params = init_generator_params(k_p, INPUT_DIM, OUTPUT_DIM, HIDDEN)

    out = jax.block_until_ready(generator_forward(z, params, OUTPUT_DIM))
    ref = jax.block_until_ready(generator_reference(z, params))

    assert out.shape == (B, OUTPUT_DIM)
    err = float(jnp.max(jnp.abs(out - ref)))
    assert jnp.allclose(out, ref, atol=2e-3, rtol=2e-3), err

    print("KERNEL_OK")
</pallas_src>

<mosaic_0001>
module attributes {stable_mosaic.version = 11 : i64} {
  func.func @generator_kernel(%arg0: memref<8x32xf32, #tpu.memory_space<vmem>>, %arg1: memref<32x256xbf16, #tpu.memory_space<vmem>>, %arg2: memref<3x256xf32, #tpu.memory_space<vmem>>, %arg3: memref<256x256xbf16, #tpu.memory_space<vmem>>, %arg4: memref<3x256xf32, #tpu.memory_space<vmem>>, %arg5: memref<256x128xbf16, #tpu.memory_space<vmem>>, %arg6: memref<1x128xf32, #tpu.memory_space<vmem>>, %arg7: memref<8x128xf32, #tpu.memory_space<vmem>>) attributes {dimension_semantics = [], scalar_prefetch = 0 : i64, scratch_operands = 0 : i64, tpu.core_type = #tpu.core_type<tc>} {
    %c0 = arith.constant 0 : index
    %c0_0 = arith.constant 0 : index
    %0 = vector.load %arg0[%c0, %c0_0] : memref<8x32xf32, #tpu.memory_space<vmem>>, vector<8x32xf32>
    %1 = arith.truncf %0 : vector<8x32xf32> to vector<8x32xbf16>
    %c0_1 = arith.constant 0 : index
    %c0_2 = arith.constant 0 : index
    %2 = vector.load %arg1[%c0_1, %c0_2] : memref<32x256xbf16, #tpu.memory_space<vmem>>, vector<32x256xbf16>
    %cst = arith.constant dense<0.000000e+00> : vector<8x256xf32>
    %3 = tpu.matmul %1, %2, %cst {dimension_numbers = #tpu.dot_dimension_numbers<[1], [0], [0], [1], [0, 0, 1, 1], [], []>} : vector<8x32xbf16>, vector<32x256xbf16>, vector<8x256xf32> -> vector<8x256xf32>
    %c0_3 = arith.constant 0 : index
    %c0_4 = arith.constant 0 : index
    %4 = vector.load %arg2[%c0_3, %c0_4] : memref<3x256xf32, #tpu.memory_space<vmem>>, vector<1x256xf32>
    %5 = vector.broadcast %4 : vector<1x256xf32> to vector<8x256xf32>
    %6 = arith.addf %3, %5 : vector<8x256xf32>
    %cst_5 = arith.constant 0.000000e+00 : f32
    %7 = vector.broadcast %cst_5 : f32 to vector<8x256xf32>
    %8 = arith.cmpf oge, %6, %7 : vector<8x256xf32>
    %cst_6 = arith.constant 2.000000e-01 : f32
    %9 = vector.broadcast %cst_6 : f32 to vector<8x256xf32>
    %10 = arith.mulf %9, %6 : vector<8x256xf32>
    %11 = arith.select %8, %6, %10 : vector<8x256xi1>, vector<8x256xf32>
    %c1 = arith.constant 1 : index
    %c0_7 = arith.constant 0 : index
    %12 = vector.load %arg2[%c1, %c0_7] : memref<3x256xf32, #tpu.memory_space<vmem>>, vector<1x256xf32>
    %c2 = arith.constant 2 : index
    %c0_8 = arith.constant 0 : index
    %13 = vector.load %arg2[%c2, %c0_8] : memref<3x256xf32, #tpu.memory_space<vmem>>, vector<1x256xf32>
    %cst_9 = arith.constant dense<0.000000e+00> : vector<256xf32>
    %14 = vector.multi_reduction <add>, %11, %cst_9 [0] : vector<8x256xf32> to vector<256xf32>
    %15 = vector.shape_cast %14 : vector<256xf32> to vector<1x256xf32>
    %cst_10 = arith.constant 8.000000e+00 : f32
    %16 = vector.broadcast %cst_10 : f32 to vector<1x256xf32>
    %17 = arith.divf %15, %16 : vector<1x256xf32>
    %18 = arith.mulf %11, %11 : vector<8x256xf32>
    %cst_11 = arith.constant dense<0.000000e+00> : vector<256xf32>
    %19 = vector.multi_reduction <add>, %18, %cst_11 [0] : vector<8x256xf32> to vector<256xf32>
    %20 = vector.shape_cast %19 : vector<256xf32> to vector<1x256xf32>
    %cst_12 = arith.constant 8.000000e+00 : f32
    %21 = vector.broadcast %cst_12 : f32 to vector<1x256xf32>
    %22 = arith.divf %20, %21 : vector<1x256xf32>
    %23 = arith.mulf %17, %17 : vector<1x256xf32>
    %24 = arith.subf %22, %23 : vector<1x256xf32>
    %cst_13 = arith.constant 9.99999974E-6 : f32
    %25 = vector.broadcast %cst_13 : f32 to vector<1x256xf32>
    %26 = arith.addf %24, %25 : vector<1x256xf32>
    %27 = math.rsqrt %26 : vector<1x256xf32>
    %28 = arith.mulf %12, %27 : vector<1x256xf32>
    %29 = arith.mulf %17, %28 : vector<1x256xf32>
    %30 = arith.subf %13, %29 : vector<1x256xf32>
    %31 = vector.broadcast %28 : vector<1x256xf32> to vector<8x256xf32>
    %32 = arith.mulf %11, %31 : vector<8x256xf32>
    %33 = vector.broadcast %30 : vector<1x256xf32> to vector<8x256xf32>
    %34 = arith.addf %32, %33 : vector<8x256xf32>
    %35 = arith.truncf %34 : vector<8x256xf32> to vector<8x256xbf16>
    %c0_14 = arith.constant 0 : index
    %c0_15 = arith.constant 0 : index
    %36 = vector.load %arg3[%c0_14, %c0_15] : memref<256x256xbf16, #tpu.memory_space<vmem>>, vector<256x256xbf16>
    %cst_16 = arith.constant dense<0.000000e+00> : vector<8x256xf32>
    %37 = tpu.matmul %35, %36, %cst_16 {dimension_numbers = #tpu.dot_dimension_numbers<[1], [0], [0], [1], [0, 0, 1, 1], [], []>} : vector<8x256xbf16>, vector<256x256xbf16>, vector<8x256xf32> -> vector<8x256xf32>
    %c0_17 = arith.constant 0 : index
    %c0_18 = arith.constant 0 : index
    %38 = vector.load %arg4[%c0_17, %c0_18] : memref<3x256xf32, #tpu.memory_space<vmem>>, vector<1x256xf32>
    %39 = vector.broadcast %38 : vector<1x256xf32> to vector<8x256xf32>
    %40 = arith.addf %37, %39 : vector<8x256xf32>
    %cst_19 = arith.constant 0.000000e+00 : f32
    %41 = vector.broadcast %cst_19 : f32 to vector<8x256xf32>
    %42 = arith.cmpf oge, %40, %41 : vector<8x256xf32>
    %cst_20 = arith.constant 2.000000e-01 : f32
    %43 = vector.broadcast %cst_20 : f32 to vector<8x256xf32>
    %44 = arith.mulf %43, %40 : vector<8x256xf32>
    %45 = arith.select %42, %40, %44 : vector<8x256xi1>, vector<8x256xf32>
    %c1_21 = arith.constant 1 : index
    %c0_22 = arith.constant 0 : index
    %46 = vector.load %arg4[%c1_21, %c0_22] : memref<3x256xf32, #tpu.memory_space<vmem>>, vector<1x256xf32>
    %c2_23 = arith.constant 2 : index
    %c0_24 = arith.constant 0 : index
    %47 = vector.load %arg4[%c2_23, %c0_24] : memref<3x256xf32, #tpu.memory_space<vmem>>, vector<1x256xf32>
    %cst_25 = arith.constant dense<0.000000e+00> : vector<256xf32>
    %48 = vector.multi_reduction <add>, %45, %cst_25 [0] : vector<8x256xf32> to vector<256xf32>
    %49 = vector.shape_cast %48 : vector<256xf32> to vector<1x256xf32>
    %cst_26 = arith.constant 8.000000e+00 : f32
    %50 = vector.broadcast %cst_26 : f32 to vector<1x256xf32>
    %51 = arith.divf %49, %50 : vector<1x256xf32>
    %52 = arith.mulf %45, %45 : vector<8x256xf32>
    %cst_27 = arith.constant dense<0.000000e+00> : vector<256xf32>
    %53 = vector.multi_reduction <add>, %52, %cst_27 [0] : vector<8x256xf32> to vector<256xf32>
    %54 = vector.shape_cast %53 : vector<256xf32> to vector<1x256xf32>
    %cst_28 = arith.constant 8.000000e+00 : f32
    %55 = vector.broadcast %cst_28 : f32 to vector<1x256xf32>
    %56 = arith.divf %54, %55 : vector<1x256xf32>
    %57 = arith.mulf %51, %51 : vector<1x256xf32>
    %58 = arith.subf %56, %57 : vector<1x256xf32>
    %cst_29 = arith.constant 9.99999974E-6 : f32
    %59 = vector.broadcast %cst_29 : f32 to vector<1x256xf32>
    %60 = arith.addf %58, %59 : vector<1x256xf32>
    %61 = math.rsqrt %60 : vector<1x256xf32>
    %62 = arith.mulf %46, %61 : vector<1x256xf32>
    %63 = arith.mulf %51, %62 : vector<1x256xf32>
    %64 = arith.subf %47, %63 : vector<1x256xf32>
    %65 = vector.broadcast %62 : vector<1x256xf32> to vector<8x256xf32>
    %66 = arith.mulf %45, %65 : vector<8x256xf32>
    %67 = vector.broadcast %64 : vector<1x256xf32> to vector<8x256xf32>
    %68 = arith.addf %66, %67 : vector<8x256xf32>
    %69 = arith.truncf %68 : vector<8x256xf32> to vector<8x256xbf16>
    %c0_30 = arith.constant 0 : index
    %c0_31 = arith.constant 0 : index
    %70 = vector.load %arg5[%c0_30, %c0_31] : memref<256x128xbf16, #tpu.memory_space<vmem>>, vector<256x128xbf16>
    %cst_32 = arith.constant dense<0.000000e+00> : vector<8x128xf32>
    %71 = tpu.matmul %69, %70, %cst_32 {dimension_numbers = #tpu.dot_dimension_numbers<[1], [0], [0], [1], [0, 0, 1, 1], [], []>} : vector<8x256xbf16>, vector<256x128xbf16>, vector<8x128xf32> -> vector<8x128xf32>
    %c0_33 = arith.constant 0 : index
    %c0_34 = arith.constant 0 : index
    %72 = vector.load %arg6[%c0_33, %c0_34] : memref<1x128xf32, #tpu.memory_space<vmem>>, vector<1x128xf32>
    %73 = vector.broadcast %72 : vector<1x128xf32> to vector<8x128xf32>
    %74 = arith.addf %71, %73 : vector<8x128xf32>
    %c0_35 = arith.constant 0 : index
    %c0_36 = arith.constant 0 : index
    %75 = vector.load %arg7[%c0_35, %c0_36] : memref<8x128xf32, #tpu.memory_space<vmem>>, vector<8x128xf32>
    tpu.vector_store %arg7[%c0_35, %c0_36], %74 {strides = array<i32>} : memref<8x128xf32, #tpu.memory_space<vmem>>, vector<8x128xf32>,
    return
  }
}

</mosaic_0001>

<bundles_post_ra>
// kernel: tpu_custom_call.1
= control target key start
LH: loop header
LB: loop body
LE: loop exit
PB: predicated region body
PF: predicated region fallthrough
CT: control target
= control target key end

     0   :  { %12 = vsyncpa [#allocation3], 0  ;;  %s1403_s0 = inlined_call_operand.hbm [shape: f32[8,32], index: 0, kind: input, shape index: {}]   ;;  %s1404_s1 = inlined_call_operand.hbm [shape: bf16[32,256], index: 1, kind: input, shape index: {}]   ;;  %s1405_s2 = inlined_call_operand.hbm [shape: f32[3,256], index: 2, kind: input, shape index: {}]   ;;  %s1406_s3 = inlined_call_operand.hbm [shape: bf16[256,256], index: 3, kind: input, shape index: {}]   ;;  %s1407_s4 = inlined_call_operand.hbm [shape: f32[3,256], index: 4, kind: input, shape index: {}]   ;;  %s1408_s5 = inlined_call_operand.hbm [shape: bf16[256,128], index: 5, kind: input, shape index: {}]   ;;  %s1409_s6 = inlined_call_operand.vmem [shape: f32[1,128], index: 6, kind: input, shape index: {}]   ;;  %s1410_s7 = inlined_call_operand.hbm [shape: f32[8,128], index: 7, kind: output, shape index: {}]  }
   0x1   :  { %13 = vsyncpa [#allocation6], 0 }
   0x2   :  { %14 = vsyncpa [#allocation9], 0 }
   0x3   :  { %15 = vsyncpa [#allocation12], 0  ;;  %s32_s26 = sshll.u32 %s1404_s1, 4  ;;  %s33_s26 = int_to_ptr.hbm [resolvable:$true] %s32_s26 }
   0x4   :  { %16 = vsyncpa [#allocation4], 0  ;;  %s1270_s27 = smov [#allocation5]   ;;  %s56_s8 = sshll.u32 %s1406_s3, 4  ;;  %s57_s8 = int_to_ptr.hbm [resolvable:$true] %s56_s8 }
   0x5   :  { %s34_s28 = sshll.u32 %s1270_s27, 4  ;;  %s1271_s9 = smov 128   ;;  %s35_s28 = int_to_ptr.vmem [resolvable:$true] %s34_s28 }
   0x6   :  { %s1272_s10 = smov 8   ;;  %s1273_s11 = smov [#allocation8]  }
   0x7   :  { %40 = dma.hbm_to_vmem [thread:$0]  %s33_s26, 512, %s35_s28, [#allocation6], %s1271_s9, %s1271_s9, %s1272_s10  }
   0x8   :  { %s58_s12 = sshll.u32 %s1273_s11, 4  ;;  %s22_s15 = sshll.u32 %s1403_s0, 4  ;;  %s59_s12 = int_to_ptr.vmem [resolvable:$true] %s58_s12  ;;  %s23_s15 = int_to_ptr.hbm [resolvable:$true] %s22_s15 }
   0x9   :  { %64 = dma.hbm_to_vmem [thread:$0]  %s57_s8, 4096, %s59_s12, [#allocation9], %s1271_s9, %s1271_s9, %s1272_s10  }
   0xa   :  { %s46_s17 = sshll.u32 %s1405_s2, 4  ;;  %s1274_s18 = smov [#allocation2]   ;;  %s47_s17 = int_to_ptr.hbm [resolvable:$true] %s46_s17 }
   0xb   :  { %s24_s19 = sshll.u32 %s1274_s18, 4  ;;  %s1275_s3 = smov [#allocation7]   ;;  %s25_s19 = int_to_ptr.vmem [resolvable:$true] %s24_s19 }
   0xc   :  { %27 = dma.hbm_to_vmem [thread:$0]  %s23_s15, 128, %s25_s19, [#allocation3]  }
   0xd   :  { %s48_s20 = sshll.u32 %s1275_s3, 4  ;;  %s70_s23 = sshll.u32 %s1407_s4, 4  ;;  %s49_s20 = int_to_ptr.vmem [resolvable:$true] %s48_s20  ;;  %s71_s23 = int_to_ptr.hbm [resolvable:$true] %s70_s23 }
   0xe   :  { %51 = dma.hbm_to_vmem [thread:$0]  %s47_s17, 128, %s49_s20, [#allocation6]  }
   0xf   :  { %s80_s25 = sshll.u32 %s1408_s5, 4  ;;  %s1276_s26 = smov [#allocation10]   ;;  %s81_s25 = int_to_ptr.hbm [resolvable:$true] %s80_s25 }
  0x10   :  { %s72_s2 = sshll.u32 %s1276_s26, 4  ;;  %s1277_s27 = smov [#allocation11]   ;;  %s73_s2 = int_to_ptr.vmem [resolvable:$true] %s72_s2 }
  0x11   :  { %75 = dma.hbm_to_vmem [thread:$0]  %s71_s23, 128, %s73_s2, [#allocation9]  }
  0x12   :  { %s82_s28 = sshll.u32 %s1277_s27, 4  ;;  %s1278_s29 = smov 64   ;;  %s83_s28 = int_to_ptr.vmem [resolvable:$true] %s82_s28 }
  0x13   :  { %s1279_s30 = smov 4  }
  0x14   :  { %88 = dma.hbm_to_vmem [thread:$0]  %s81_s25, 2048, %s83_s28, [#allocation12], %s1278_s29, %s1278_s29, %s1279_s30  }
  0x15   :  { %1260 = dma.done.wait [#allocation3], 128  }
  0x16   :  { %1261 = vsyncadd [#allocation3], 4294967168 }
  0x17   :  { %1262 = dma.done.wait [#allocation6], 640  }
  0x18   :  { %1263 = vsyncadd [#allocation6], 4294966656 }
  0x19   :  { %1264 = dma.done.wait [#allocation9], 4224  }
  0x1a   :  { %1265 = vsyncadd [#allocation9], 4294963072 }
  0x1b   :  { %1266 = dma.done.wait [#allocation12], 2048  }
  0x1c   :  { %1267 = vsyncadd [#allocation12], 4294965248  ;;  %v817_v0 = vld [vmem:[#allocation5 + $0x10] sm:$0xf]  ;;  %v1020_v1 = vld [vmem:[#allocation5 + $0x14] sm:$0xf0] }
  0x1d   :  { %v1019_v2 = vld [vmem:[#allocation5 + $0x14] sm:$0xf]  ;;  %v818_v3 = vor.u32 %v1020_v1, %v817_v0  ;;  %v819_v4 = vld [vmem:[#allocation5 + $0x18] sm:$0xf0]  ;;  %v809_v5 = vld [vmem:[#allocation5] sm:$0xf] }
  0x1e   :  { %v1018_v6 = vld [vmem:[#allocation5 + $0x4] sm:$0xf0]  ;;  %v822_v7 = vor.u32 %v1019_v2, %v819_v4  ;;  %v1017_v8 = vld [vmem:[#allocation5 + $0x4] sm:$0xf]  ;;  %v811_v9 = vld [vmem:[#allocation5 + $0x8] sm:$0xf0] }
  0x1f   :  { %158 = vmatpush.bf16.msra.mxu0 %v818_v3  ;;  %v810_v10 = vor.u32 %v1018_v6, %v809_v5  ;;  %v116_v11 = vld [vmem:[#allocation2] sm:$0xff]  ;;  %v814_v12 = vor.u32 %v1017_v8, %v811_v9  ;;  %vm148_vm0 = vcmask 261120   ;;  %v1340_v14 = vld [vmem:[#allocation7] ss:$4 sm:$0x3]  ;;  %v1280_v20 = vmov 8.0  }
  0x20   :  { %171 = vmatpush.bf16.msra.mxu1 %v822_v7  ;;  %v117_v13 = vpack.c.bf16 %v116_v11, %v116_v11  ;;  %v124_v15 = vperm.slane %v1340_v14, 0  ;;  %v125_v16 = vperm.slane %v1340_v14, 1  ;;  %v883_v17 = vld [vmem:[#allocation8 + $0x70] sm:$0xf]  ;;  %v1036_v18 = vld [vmem:[#allocation8 + $0x74] sm:$0xf0]  ;;  %1082 = vrcp.f32 %v1280_v20 }
  0x21   :  { %v947_v19 = vld [vmem:[#allocation8 + $0xf0] sm:$0xf]  ;;  %v884_v21 = vor.u32 %v1036_v18, %v883_v17  ;;  %v1052_v22 = vld [vmem:[#allocation8 + $0xf4] sm:$0xf0]  ;;  %v1035_v23 = vld [vmem:[#allocation8 + $0x74] sm:$0xf] }
  0x22   :  { %v885_v24 = vld [vmem:[#allocation8 + $0x78] sm:$0xf0]  ;;  %v948_v25 = vor.u32 %v1052_v22, %v947_v19  ;;  %v1051_v27 = vld [vmem:[#allocation8 + $0xf4] sm:$0xf]  ;;  %v875_v29 = vld [vmem:[#allocation8 + $0x60] sm:$0xf] }
  0x23   :  { %159 = vmatpush.bf16.msra.mxu0 %v810_v10  ;;  %v888_v26 = vor.u32 %v1035_v23, %v885_v24  ;;  %v949_v28 = vld [vmem:[#allocation8 + $0xf8] sm:$0xf0]  ;;  %480 = vmatpush.bf16.msra.mxu2 %v884_v21  ;;  %v1034_v31 = vld [vmem:[#allocation8 + $0x64] sm:$0xf0]  ;;  %v939_v32 = vld [vmem:[#allocation8 + $0xe0] sm:$0xf] }
  0x24   :  { %172 = vmatpush.bf16.msra.mxu1 %v814_v12  ;;  %v952_v30 = vor.u32 %v1051_v27, %v949_v28  ;;  %v1050_v33 = vld [vmem:[#allocation8 + $0xe4] sm:$0xf0]  ;;  %493 = vmatpush.bf16.msra.mxu3 %v948_v25  ;;  %v876_v34 = vor.u32 %v1034_v31, %v875_v29  ;;  %v1033_v36 = vld [vmem:[#allocation8 + $0x64] sm:$0xf]  ;;  %v877_v37 = vld [vmem:[#allocation8 + $0x68] sm:$0xf0] }
  0x25   :  { %v940_v35 = vor.u32 %v1050_v33, %v939_v32  ;;  %v1049_v38 = vld [vmem:[#allocation8 + $0xe4] sm:$0xf]  ;;  %v880_v39 = vor.u32 %v1033_v36, %v877_v37  ;;  %v941_v40 = vld [vmem:[#allocation8 + $0xe8] sm:$0xf0]  ;;  %v867_v41 = vld [vmem:[#allocation8 + $0x50] sm:$0xf] }
  0x26   :  { %823 = vmatmul.msk.bf16.vlgmr.msra.gmra.mxu0 %vm148_vm0, %v117_v13  ;;  %v1032_v42 = vld [vmem:[#allocation8 + $0x54] sm:$0xf0]  ;;  %v944_v43 = vor.u32 %v1049_v38, %v941_v40  ;;  %v931_v44 = vld [vmem:[#allocation8 + $0xd0] sm:$0xf]  ;;  %v1031_v46 = vld [vmem:[#allocation8 + $0x54] sm:$0xf]  ;;  %v1344_v47 = vpop.eup %1082 }
  0x27   :  { %824 = vmatmul.msk.bf16.vlgmr.msra.gmra.mxu1 %vm148_vm0, %v117_v13  ;;  %506 = vmatpush.bf16.msrb.mxu0 %v888_v26  ;;  %v1048_v45 = vld [vmem:[#allocation8 + $0xd4] sm:$0xf0]  ;;  %v868_v48 = vor.u32 %v1032_v42, %v867_v41  ;;  %v869_v49 = vld [vmem:[#allocation8 + $0x58] sm:$0xf0]  ;;  %v1047_v50 = vld [vmem:[#allocation8 + $0xd4] sm:$0xf]  ;;  %vm205_vm3 = vweird.f32 %v1344_v47 }
  0x28   :  { %519 = vmatpush.bf16.msrb.mxu1 %v952_v30  ;;  %481 = vmatpush.bf16.msra.mxu2 %v876_v34  ;;  %v933_v51 = vld [vmem:[#allocation8 + $0xd8] sm:$0xf0]  ;;  %v932_v52 = vor.u32 %v1048_v45, %v931_v44  ;;  %v872_v53 = vor.u32 %v1031_v46, %v869_v49  ;;  %v859_v54 = vld [vmem:[#allocation8 + $0x40] sm:$0xf]  ;;  %v1030_v55 = vld [vmem:[#allocation8 + $0x44] sm:$0xf0] }
  0x29   :  { %494 = vmatpush.bf16.msra.mxu3 %v940_v35  ;;  %v923_v56 = vld [vmem:[#allocation8 + $0xc0] sm:$0xf]  ;;  %v936_v57 = vor.u32 %v1047_v50, %v933_v51  ;;  %v1046_v58 = vld [vmem:[#allocation8 + $0xc4] sm:$0xf0]  ;;  %v1029_v59 = vld [vmem:[#allocation8 + $0x44] sm:$0xf]  ;;  %v860_v1 = vor.u32 %v1030_v55, %v859_v54 }
  0x2a   :  { %v861_v60 = vld [vmem:[#allocation8 + $0x48] sm:$0xf0]  ;;  %v201_v61 = vmul.f32 8.0, %v1344_v47  ;;  %v1045_v62 = vld [vmem:[#allocation8 + $0xc4] sm:$0xf]  ;;  %v924_v5 = vor.u32 %v1046_v58, %v923_v56  ;;  %vm254_vm9 = vcmask 1040384  }
  0x2b   :  { %507 = vmatpush.bf16.msrb.mxu0 %v880_v39  ;;  %v925_v63 = vld [vmem:[#allocation8 + $0xc8] sm:$0xf0]  ;;  %v851_v2 = vld [vmem:[#allocation8 + $0x30] sm:$0xf]  ;;  %v864_v6 = vor.u32 %v1029_v59, %v861_v60  ;;  %v1028_v7 = vld [vmem:[#allocation8 + $0x34] sm:$0xf0] }
  0x2c   :  { %520 = vmatpush.bf16.msrb.mxu1 %v944_v43  ;;  %482 = vmatpush.bf16.msra.mxu2 %v868_v48  ;;  %v915_v8 = vld [vmem:[#allocation8 + $0xb0] sm:$0xf]  ;;  %v1044_v9 = vld [vmem:[#allocation8 + $0xb4] sm:$0xf0]  ;;  %v928_v11 = vor.u32 %v1045_v62, %v925_v63  ;;  %v1027_v12 = vld [vmem:[#allocation8 + $0x34] sm:$0xf]  ;;  %v852_v21 = vor.u32 %v1028_v7, %v851_v2 }
  0x2d   :  { %495 = vmatpush.bf16.msra.mxu3 %v932_v52  ;;  %v853_v13 = vld [vmem:[#allocation8 + $0x38] sm:$0xf0]  ;;  %v1043_v17 = vld [vmem:[#allocation8 + $0xb4] sm:$0xf]  ;;  %v202_v19 = vsub.f32 1.0, %v201_v61  ;;  %v916_v14 = vor.u32 %v1044_v9, %v915_v8  ;;  %s1281_s8 = smov [#allocation13]  }
  0x2e   :  { %v843_v22 = vld [vmem:[#allocation8 + $0x20] sm:$0xf]  ;;  %v1026_v24 = vld [vmem:[#allocation8 + $0x24] sm:$0xf0]  ;;  %v1025_v31 = vld [vmem:[#allocation8 + $0x24] sm:$0xf] }
  0x2f   :  { %508 = vmatpush.bf16.msrb.mxu0 %v872_v53  ;;  %v907_v25 = vld [vmem:[#allocation8 + $0xa0] sm:$0xf]  ;;  %v1042_v26 = vld [vmem:[#allocation8 + $0xa4] sm:$0xf0]  ;;  %v845_v32 = vld [vmem:[#allocation8 + $0x28] sm:$0xf0]  ;;  %v203_v34 = vmul.f32 %v1344_v47, %v202_v19  ;;  %v844_v41 = vor.u32 %v1026_v24, %v843_v22 }
  0x30   :  { %521 = vmatpush.bf16.msrb.mxu1 %v936_v57  ;;  %483 = vmatpush.bf16.msra.mxu2 %v860_v1  ;;  %v1041_v36 = vld [vmem:[#allocation8 + $0xa4] sm:$0xf]  ;;  %v909_v37 = vld [vmem:[#allocation8 + $0xa8] sm:$0xf0]  ;;  %v835_v42 = vld [vmem:[#allocation8 + $0x10] sm:$0xf]  ;;  %v908_v48 = vor.u32 %v1042_v26, %v907_v25  ;;  %v848_v49 = vor.u32 %v1025_v31, %v845_v32 }
  0x31   :  { %496 = vmatpush.bf16.msra.mxu3 %v924_v5  ;;  %v1024_v43 = vld [vmem:[#allocation8 + $0x14] sm:$0xf0]  ;;  %v899_v50 = vld [vmem:[#allocation8 + $0x90] sm:$0xf]  ;;  %v912_v54 = vor.u32 %v1041_v36, %v909_v37  ;;  %v1023_v55 = vld [vmem:[#allocation8 + $0x14] sm:$0xf]  ;;  %v204_v58 = vadd.f32 %v1344_v47, %v203_v34 }
  0x32   :  { %v1040_v51 = vld [vmem:[#allocation8 + $0x94] sm:$0xf0]  ;;  %v837_v56 = vld [vmem:[#allocation8 + $0x18] sm:$0xf0]  ;;  %v1039_v60 = vld [vmem:[#allocation8 + $0x94] sm:$0xf] }
  0x33   :  { %509 = vmatpush.bf16.msrb.mxu0 %v864_v6  ;;  %v901_v61 = vld [vmem:[#allocation8 + $0x98] sm:$0xf0]  ;;  %v827_v1 = vld [vmem:[#allocation8] sm:$0xf]  ;;  %v1022_v2 = vld [vmem:[#allocation8 + $0x4] sm:$0xf0]  ;;  %v900_v5 = vor.u32 %v1040_v51, %v899_v50  ;;  %v840_v6 = vor.u32 %v1023_v55, %v837_v56 }
  0x34   :  { %522 = vmatpush.bf16.msrb.mxu1 %v928_v11  ;;  %484 = vmatpush.bf16.msra.mxu2 %v852_v21  ;;  %v891_v7 = vld [vmem:[#allocation8 + $0x80] sm:$0xf]  ;;  %v1038_v8 = vld [vmem:[#allocation8 + $0x84] sm:$0xf0]  ;;  %v904_v11 = vor.u32 %v1039_v60, %v901_v61  ;;  %v828_v22 = vor.u32 %v1022_v2, %v827_v1  ;;  %s792_s9 = sshll.u32 %s1281_s8, 4  ;;  %s794_s12 = sshll.u32 %s1410_s7, 4  ;;  %s793_s9 = int_to_ptr.vmem [resolvable:$true] %s792_s9  ;;  %s795_s12 = int_to_ptr.hbm [resolvable:$true] %s794_s12 }
  0x35   :  { %497 = vmatpush.bf16.msra.mxu3 %v916_v14  ;;  %v892_v25 = vor.u32 %v1038_v8, %v891_v7 }
  0x38   :  { %485 = vmatpush.bf16.msra.mxu2 %v844_v41 }
  0x39   :  { %498 = vmatpush.bf16.msra.mxu3 %v908_v48 }
  0x3d   :  { %499 = vmatpush.bf16.msra.mxu3 %v900_v5 }
  0x41   :  { %500 = vmatpush.bf16.msra.mxu3 %v892_v25 }
  0xa3   :  { %v161_v0 = vpop.f32.mrf.mxu0 }
  0xa4   :  { %v162_v3 = vadd.f32 %v161_v0, %v124_v15  ;;  %v174_v4 = vpop.f32.mrf.mxu1  ;;  %v917_v15 = vld [vmem:[#allocation8 + $0xb8] sm:$0xf0]  ;;  %v836_v0 = vor.u32 %v1024_v43, %v835_v42 }
  0xa5   :  { %v175_v10 = vadd.f32 %v174_v4, %v125_v16  ;;  %v856_v16 = vor.u32 %v1027_v12, %v853_v13  ;;  %v920_v30 = vor.u32 %v1043_v17, %v917_v15  ;;  %v1021_v12 = vld [vmem:[#allocation8 + $0x4] sm:$0xf]  ;;  %v829_v13 = vld [vmem:[#allocation8 + $0x8] sm:$0xf0] }
  0xa6   :  { %vm178_vm1 = vcmp.ge.f32.partialorder %v162_v3, 0.0  ;;  %v180_v18 = vmul.f32 0.2, %v162_v3  ;;  %v1037_v15 = vld [vmem:[#allocation8 + $0x84] sm:$0xf]  ;;  %486 = vmatpush.bf16.msra.mxu2 %v836_v0  ;;  %v832_v26 = vor.u32 %v1021_v12, %v829_v13 }
  0xa7   :  { %vm179_vm2 = vcmp.ge.f32.partialorder %v175_v10, 0.0  ;;  %v181_v20 = vmul.f32 0.2, %v175_v10  ;;  %510 = vmatpush.bf16.msrb.mxu0 %v856_v16  ;;  %523 = vmatpush.bf16.msrb.mxu1 %v920_v30 }
  0xa8   :  { %v1349_v23 = vsel %vm178_vm1, %v162_v3, %v180_v18  ;;  %v1367_v18 = vsel %vm205_vm3, %v1344_v47, %v204_v58 }
  0xa9   :  { %v188_v27 = vrot.slane %v1349_v23, 4  ;;  %v209_v28 = vmul.f32 %v1349_v23, %v1349_v23  ;;  %v1354_v29 = vsel %vm179_vm2, %v175_v10, %v181_v20  ;;  %v893_v20 = vld [vmem:[#allocation8 + $0x88] sm:$0xf0] }
  0xaa   :  { %v194_v33 = vrot.slane %v1354_v29, 4  ;;  %v210_v35 = vmul.f32 %v1354_v29, %v1354_v29  ;;  %487 = vmatpush.bf16.msra.mxu2 %v828_v22 }
  0xab   :  { %v189_v38 = vadd.f32 %v188_v27, %v1349_v23  ;;  %v211_v39 = vrot.slane %v209_v28, 4  ;;  %v163_v40 = vpop.f32.mrf.mxu0  ;;  %511 = vmatpush.bf16.msrb.mxu0 %v848_v49  ;;  %524 = vmatpush.bf16.msrb.mxu1 %v912_v54  ;;  %v185_v54 = vld [vmem:[#allocation7 + $0x1] ss:$4 sm:$0x3] }
  0xac   :  { %v195_v44 = vadd.f32 %v194_v33, %v1354_v29  ;;  %v217_v45 = vrot.slane %v210_v35, 4  ;;  %v176_v46 = vpop.f32.mrf.mxu1 }
  0xad   :  { %v190_v52 = vrot.slane %v189_v38, 2  ;;  %v212_v53 = vadd.f32 %v211_v39, %v209_v28  ;;  %v896_v28 = vor.u32 %v1037_v15, %v893_v20 }
  0xae   :  { %v196_v57 = vrot.slane %v195_v44, 2  ;;  %v218_v59 = vadd.f32 %v217_v45, %v210_v35 }
  0xaf   :  { %v191_v62 = vadd.f32 %v190_v52, %v189_v38  ;;  %v213_v63 = vrot.slane %v212_v53, 2  ;;  %512 = vmatpush.bf16.msrb.mxu0 %v840_v6  ;;  %525 = vmatpush.bf16.msrb.mxu1 %v904_v11  ;;  %v314_v11 = vld [vmem:[#allocation10] ss:$4 sm:$0x3] }
  0xb0   :  { %v197_v3 = vadd.f32 %v196_v57, %v195_v44  ;;  %v219_v4 = vrot.slane %v218_v59, 2  ;;  %v317_v12 = vperm.slane %v314_v11, 1  ;;  %v316_v15 = vperm.slane %v314_v11, 0 }
  0xb1   :  { %v192_v9 = vrot.slane %v191_v62, 1  ;;  %v214_v10 = vadd.f32 %v213_v63, %v212_v53 }
  0xb2   :  { %v198_v17 = vrot.slane %v197_v3, 1  ;;  %v220_v19 = vadd.f32 %v219_v4, %v218_v59 }
  0xb3   :  { %v215_v21 = vrot.slane %v214_v10, 1  ;;  %v193_v14 = vadd.f32 %v192_v9, %v191_v62  ;;  %513 = vmatpush.bf16.msrb.mxu0 %v832_v26  ;;  %526 = vmatpush.bf16.msrb.mxu1 %v896_v28  ;;  %v187_v62 = vld [vmem:[#allocation7 + $0x2] ss:$4 sm:$0x3] }
  0xb4   :  { %v199_v16 = vadd.f32 %v198_v17, %v197_v3  ;;  %v221_v24 = vrot.slane %v220_v19, 1 }
  0xb5   :  { %v216_v27 = vadd.f32 %v215_v21, %v214_v10  ;;  %v207_v30 = vmul.f32 %v1367_v18, %v193_v14  ;;  %v1068_v21 = vld [vmem:[#allocation11 + $0x78] sm:$0xff] }
  0xb6   :  { %v222_v47 = vadd.f32 %v221_v24, %v220_v19  ;;  %v208_v31 = vmul.f32 %v1367_v18, %v199_v16  ;;  %773 = vmatpush.bf16.msrb.mxu3 %v1068_v21  ;;  %v1059_v16 = vld [vmem:[#allocation11 + $0x30] sm:$0xff] }
  0xb7   :  { %v223_v32 = vmul.f32 %v216_v27, %v1367_v18  ;;  %v225_v33 = vmul.f32 %v207_v30, %v207_v30  ;;  %v1067_v24 = vld [vmem:[#allocation11 + $0x70] sm:$0xff] }
  0xb8   :  { %v224_v34 = vmul.f32 %v222_v47, %v1367_v18  ;;  %v226_v35 = vmul.f32 %v208_v31, %v208_v31 }
  0xb9   :  { %v227_v36 = vsub.f32 %v223_v32, %v225_v33  ;;  %v1058_v32 = vld [vmem:[#allocation11 + $0x28] sm:$0xff] }
  0xba   :  { %v228_v37 = vsub.f32 %v224_v34, %v226_v35  ;;  %774 = vmatpush.bf16.msrb.mxu3 %v1067_v24  ;;  %v1066_v33 = vld [vmem:[#allocation11 + $0x68] sm:$0xff] }
  0xbb   :  { %v229_v38 = vadd.f32 1e-05, %v227_v36 }
  0xbc   :  { %v230_v39 = vadd.f32 1e-05, %v228_v37 }
  0xbd   :  { %1084 = vrsqrt.f32 %v229_v38  ;;  %vm237_vm8 = vweird.f32 %v229_v38 }
  0xbe   :  { %1086 = vrsqrt.f32 %v230_v39  ;;  %vm247_vm6 = vweird.f32 %v230_v39  ;;  %775 = vmatpush.bf16.msrb.mxu3 %v1066_v33 }
  0xc3   :  { %v1085_v40 = vpop.eup %1084 }
  0xc4   :  { %v1087_v41 = vpop.eup %1086  ;;  %v232_v42 = vmul.f32 %v1085_v40, %v229_v38  ;;  %vm238_vm5 = vweird.f32 %v1085_v40 }
  0xc5   :  { %v242_v43 = vmul.f32 %v1087_v41, %v230_v39  ;;  %vm248_vm4 = vweird.f32 %v1087_v41  ;;  %vm239_vm10 = vmor %vm237_vm8, %vm238_vm5 }
  0xc6   :  { %v233_v44 = vmul.f32 %v1085_v40, %v232_v42  ;;  %vm249_vm7 = vmor %vm247_vm6, %vm248_vm4 }
  0xc7   :  { %v243_v45 = vmul.f32 %v1087_v41, %v242_v43 }
  0xc8   :  { %v234_v46 = vmul.f32 0.5, %v233_v44  ;;  %v1057_v44 = vld [vmem:[#allocation11 + $0x20] sm:$0xff] }
  0xc9   :  { %v244_v48 = vmul.f32 0.5, %v243_v45  ;;  %v1065_v45 = vld [vmem:[#allocation11 + $0x60] sm:$0xff] }
  0xca   :  { %v235_v49 = vsub.f32 1.5, %v234_v46  ;;  %776 = vmatpush.bf16.msrb.mxu3 %v1065_v45 }
  0xcb   :  { %v245_v50 = vsub.f32 1.5, %v244_v48 }
  0xcc   :  { %v236_v51 = vmul.f32 %v1085_v40, %v235_v49 }
  0xcd   :  { %v246_v52 = vmul.f32 %v1087_v41, %v245_v50 }
  0xce   :  { %v240_v56 = vsel %vm239_vm10, %v1085_v40, %v236_v51 }
  0xcf   :  { %v250_v53 = vsel %vm249_vm7, %v1087_v41, %v246_v52 }
  0xd0   :  { %v253_v55 = vrot.slane %v250_v53, 7 }
  0xd2   :  { %v255_v57 = vsel %vm254_vm9, %v240_v56, %v253_v55  ;;  %v1056_v55 = vld [vmem:[#allocation11 + $0x18] sm:$0xff] }
  0xd3   :  { %v257_v58 = vmul.f32 %v255_v57, %v185_v54  ;;  %v1064_v56 = vld [vmem:[#allocation11 + $0x58] sm:$0xff] }
  0xd4   :  { %777 = vmatpush.bf16.msrb.mxu3 %v1064_v56 }
  0xd5   :  { %v259_v59 = vperm.slane %v257_v58, 0  ;;  %v260_v60 = vperm.slane %v257_v58, 1 }
  0xd7   :  { %v264_v61 = vmul.f32 %v260_v60, %v208_v31  ;;  %v263_v63 = vmul.f32 %v259_v59, %v207_v30  ;;  %v271_v3 = vmul.f32 %v259_v59, %v1349_v23  ;;  %v272_v5 = vmul.f32 %v260_v60, %v1354_v29  ;;  %v1060_v23 = vld [vmem:[#allocation11 + $0x38] sm:$0xff] }
  0xd8   :  { %760 = vmatpush.bf16.msrb.mxu2 %v1060_v23 }
  0xd9   :  { %v267_v0 = vrot.slane %v264_v61, 7 }
  0xdb   :  { %v268_v1 = vsel %vm254_vm9, %v263_v63, %v267_v0 }
  0xdc   :  { %v270_v2 = vsub.f32 %v187_v62, %v268_v1  ;;  %761 = vmatpush.bf16.msrb.mxu2 %v1059_v16  ;;  %v1055_v1 = vld [vmem:[#allocation11 + $0x10] sm:$0xff] }
  0xde   :  { %v274_v4 = vperm.slane %v270_v2, 0  ;;  %v275_v6 = vperm.slane %v270_v2, 1  ;;  %v1063_v2 = vld [vmem:[#allocation11 + $0x50] sm:$0xff] }
  0xdf   :  { %778 = vmatpush.bf16.msrb.mxu3 %v1063_v2 }
  0xe0   :  { %v278_v7 = vadd.f32 %v274_v4, %v271_v3  ;;  %v279_v8 = vadd.f32 %v275_v6, %v272_v5  ;;  %762 = vmatpush.bf16.msrb.mxu2 %v1058_v32  ;;  %v539_v32 = vld [vmem:[#allocation10 + $0x1] ss:$4 sm:$0x3] }
  0xe2   :  { %v280_v9 = vpack.c.bf16 %v278_v7, %v278_v7  ;;  %v281_v10 = vpack.c.bf16 %v279_v8, %v279_v8 }
  0xe4   :  { %488 = vmatmul.bf16.vlgmr.msra.gmra.mxu2 %v280_v9  ;;  %501 = vmatmul.bf16.vlgmr.msra.gmra.mxu3 %v281_v10 }
  0xe5   :  { %514 = vmatmul.bf16.vlgmr.msrb.gmra.mxu0 %v280_v9  ;;  %527 = vmatmul.bf16.vlgmr.msrb.gmra.mxu1 %v281_v10  ;;  %v1054_v9 = vld [vmem:[#allocation11 + $0x8] sm:$0xff] }
  0xe6   :  { %763 = vmatpush.bf16.msrb.mxu2 %v1057_v44  ;;  %v1062_v10 = vld [vmem:[#allocation11 + $0x48] sm:$0xff] }
  0xe7   :  { %779 = vmatpush.bf16.msrb.mxu3 %v1062_v10 }
  0xea   :  { %764 = vmatpush.bf16.msrb.mxu2 %v1056_v55  ;;  %v1081_v55 = vld [vmem:[%s1409_s6] ss:$0 sm:$0xff] }
  0xee   :  { %765 = vmatpush.bf16.msrb.mxu2 %v1055_v1 }
  0xf2   :  { %766 = vmatpush.bf16.msrb.mxu2 %v1054_v9 }
 0x162   :  { %v515_v13 = vpop.f32.mrf.mxu0  ;;  %v528_v17 = vpop.f32.mrf.mxu1 }
 0x163   :  { %v516_v19 = vadd.f32 %v515_v13, %v317_v12 }
 0x165   :  { %v529_v20 = vadd.f32 %v528_v17, %v516_v19  ;;  %v1053_v19 = vld [vmem:[#allocation11] sm:$0xff] }
 0x166   :  { %767 = vmatpush.bf16.msrb.mxu2 %v1053_v19 }
 0x167   :  { %vm533_vm11 = vcmp.ge.f32.partialorder %v529_v20, 0.0  ;;  %v535_v29 = vmul.f32 0.2, %v529_v20  ;;  %v489_v22 = vpop.f32.mrf.mxu2  ;;  %v502_v14 = vpop.f32.mrf.mxu3 }
 0x168   :  { %v490_v25 = vadd.f32 %v489_v22, %v316_v15  ;;  %v1061_v15 = vld [vmem:[#allocation11 + $0x40] sm:$0xff] }
 0x169   :  { %v1377_v26 = vsel %vm533_vm11, %v529_v20, %v535_v29  ;;  %780 = vmatpush.bf16.msrb.mxu3 %v1061_v15 }
 0x16a   :  { %v548_v27 = vrot.slane %v1377_v26, 4  ;;  %v557_v28 = vmul.f32 %v1377_v26, %v1377_v26  ;;  %v503_v30 = vadd.f32 %v502_v14, %v490_v25  ;;  %v517_v47 = vpop.f32.mrf.mxu0  ;;  %v530_v31 = vpop.f32.mrf.mxu1 }
 0x16c   :  { %v549_v34 = vadd.f32 %v548_v27, %v1377_v26  ;;  %v564_v35 = vrot.slane %v557_v28, 4  ;;  %vm532_vm12 = vcmp.ge.f32.partialorder %v503_v30, 0.0  ;;  %v534_v36 = vmul.f32 0.2, %v503_v30 }
 0x16e   :  { %v550_v37 = vrot.slane %v549_v34, 2  ;;  %v565_v38 = vadd.f32 %v564_v35, %v557_v28  ;;  %v1383_v39 = vsel %vm532_vm12, %v503_v30, %v534_v36 }
 0x16f   :  { %v542_v40 = vrot.slane %v1383_v39, 4  ;;  %v556_v41 = vmul.f32 %v1383_v39, %v1383_v39  ;;  %v491_v42 = vpop.f32.mrf.mxu2  ;;  %v504_v43 = vpop.f32.mrf.mxu3 }
 0x170   :  { %v551_v46 = vadd.f32 %v550_v37, %v549_v34  ;;  %v566_v48 = vrot.slane %v565_v38, 2 }
 0x171   :  { %v543_v49 = vadd.f32 %v542_v40, %v1383_v39  ;;  %v558_v50 = vrot.slane %v556_v41, 4 }
 0x172   :  { %v552_v51 = vrot.slane %v551_v46, 1  ;;  %v567_v52 = vadd.f32 %v566_v48, %v565_v38 }
 0x173   :  { %v544_v53 = vrot.slane %v543_v49, 2  ;;  %v559_v54 = vadd.f32 %v558_v50, %v556_v41  ;;  %v541_v41 = vld [vmem:[#allocation10 + $0x2] ss:$4 sm:$0x3] }
 0x174   :  { %v553_v57 = vadd.f32 %v552_v51, %v551_v46  ;;  %v568_v58 = vrot.slane %v567_v52, 1 }
 0x175   :  { %v545_v59 = vadd.f32 %v544_v53, %v543_v49  ;;  %v560_v60 = vrot.slane %v559_v54, 2 }
 0x176   :  { %v555_v61 = vmul.f32 %v553_v57, %v1367_v18  ;;  %v569_v62 = vadd.f32 %v568_v58, %v567_v52 }
 0x177   :  { %v546_v63 = vrot.slane %v545_v59, 1  ;;  %v561_v0 = vadd.f32 %v560_v60, %v559_v54 }
 0x178   :  { %v571_v3 = vmul.f32 %v569_v62, %v1367_v18  ;;  %v573_v4 = vmul.f32 %v555_v61, %v555_v61 }
 0x179   :  { %v547_v5 = vadd.f32 %v546_v63, %v545_v59  ;;  %v562_v6 = vrot.slane %v561_v0, 1 }
 0x17a   :  { %v575_v7 = vsub.f32 %v571_v3, %v573_v4 }
 0x17b   :  { %v563_v8 = vadd.f32 %v562_v6, %v561_v0  ;;  %v554_v11 = vmul.f32 %v547_v5, %v1367_v18 }
 0x17c   :  { %v577_v12 = vadd.f32 1e-05, %v575_v7 }
 0x17d   :  { %v570_v13 = vmul.f32 %v563_v8, %v1367_v18  ;;  %v572_v17 = vmul.f32 %v554_v11, %v554_v11 }
 0x17e   :  { %1088 = vrsqrt.f32 %v577_v12  ;;  %vm594_vm14 = vweird.f32 %v577_v12 }
 0x17f   :  { %v574_v20 = vsub.f32 %v570_v13, %v572_v17 }
 0x181   :  { %v576_v23 = vadd.f32 1e-05, %v574_v20 }
 0x183   :  { %1090 = vrsqrt.f32 %v576_v23  ;;  %vm584_vm1 = vweird.f32 %v576_v23 }
 0x184   :  { %v1089_v21 = vpop.eup %1088 }
 0x185   :  { %v589_v29 = vmul.f32 %v1089_v21, %v577_v12  ;;  %vm595_vm13 = vweird.f32 %v1089_v21 }
 0x186   :  { %vm596_vm15 = vmor %vm594_vm14, %vm595_vm13 }
 0x187   :  { %v590_v22 = vmul.f32 %v1089_v21, %v589_v29 }
 0x189   :  { %v1091_v14 = vpop.eup %1090  ;;  %v591_v16 = vmul.f32 0.5, %v590_v22 }
 0x18a   :  { %v579_v24 = vmul.f32 %v1091_v14, %v576_v23  ;;  %vm585_vm0 = vweird.f32 %v1091_v14 }
 0x18b   :  { %v592_v25 = vsub.f32 1.5, %v591_v16  ;;  %vm586_vm2 = vmor %vm584_vm1, %vm585_vm0 }
 0x18c   :  { %v580_v27 = vmul.f32 %v1091_v14, %v579_v24 }
 0x18d   :  { %v593_v18 = vmul.f32 %v1089_v21, %v592_v25 }
 0x18e   :  { %v581_v28 = vmul.f32 0.5, %v580_v27 }
 0x18f   :  { %v597_v47 = vsel %vm596_vm15, %v1089_v21, %v593_v18 }
 0x190   :  { %v582_v30 = vsub.f32 1.5, %v581_v28  ;;  %v600_v33 = vrot.slane %v597_v47, 7 }
 0x192   :  { %v583_v31 = vmul.f32 %v1091_v14, %v582_v30 }
 0x194   :  { %v587_v34 = vsel %vm586_vm2, %v1091_v14, %v583_v31 }
 0x195   :  { %v601_v35 = vsel %vm254_vm9, %v587_v34, %v600_v33 }
 0x196   :  { %v603_v36 = vmul.f32 %v601_v35, %v539_v32 }
 0x198   :  { %v605_v37 = vperm.slane %v603_v36, 0  ;;  %v606_v38 = vperm.slane %v603_v36, 1 }
 0x19a   :  { %v610_v40 = vmul.f32 %v606_v38, %v555_v61  ;;  %v609_v42 = vmul.f32 %v605_v37, %v554_v11  ;;  %v617_v46 = vmul.f32 %v605_v37, %v1383_v39  ;;  %v618_v49 = vmul.f32 %v606_v38, %v1377_v26 }
 0x19c   :  { %v613_v43 = vrot.slane %v610_v40, 7 }
 0x19e   :  { %v614_v44 = vsel %vm254_vm9, %v609_v42, %v613_v43 }
 0x19f   :  { %v616_v45 = vsub.f32 %v541_v41, %v614_v44 }
 0x1a1   :  { %v620_v48 = vperm.slane %v616_v45, 0  ;;  %v621_v50 = vperm.slane %v616_v45, 1 }
 0x1a3   :  { %v624_v51 = vadd.f32 %v620_v48, %v617_v46  ;;  %v625_v52 = vadd.f32 %v621_v50, %v618_v49 }
 0x1a5   :  { %v626_v53 = vpack.c.bf16 %v624_v51, %v624_v51  ;;  %v627_v54 = vpack.c.bf16 %v625_v52, %v625_v52 }
 0x1a7   :  { %768 = vmatmul.bf16.vlgmr.msrb.gmra.mxu2 %v626_v53  ;;  %781 = vmatmul.bf16.vlgmr.msrb.gmra.mxu3 %v627_v54 }
 0x22a   :  { %v769_v56 = vpop.f32.mrf.mxu2  ;;  %v782_v57 = vpop.f32.mrf.mxu3 }
 0x22b   :  { %v770_v26 = vadd.f32 %v1081_v55, %v769_v56 }
 0x22d   :  { %v783_v39 = vadd.f32 %v782_v57, %v770_v26 }
 0x22f   :  { %786 = vst [vmem:[#allocation13] sm:$0xff] %v783_v39 }
 0x230   :  { %797 = dma.vmem_to_hbm [thread:$0]  %s793_s9, 128, %s795_s12, [#allocation4]  }
 0x232   :  { %v771_v58 = vpop.f32.mrf.mxu2  ;;  %v784_v59 = vpop.f32.mrf.mxu3 }
 0x233   :  { %1268 = dma.done.wait [#allocation4], 128  }
 0x234   :  { %1269 = vsyncadd [#allocation4], 4294967168 }
 0x235   :  { %802 = vsyncpa [#allocation3], 1 }
 0x236   :  { %803 = vsyncpa [#allocation6], 1 }
 0x237   :  { %804 = vsyncpa [#allocation9], 1 }
 0x238   :  { %805 = vsyncpa [#allocation12], 1 }
 0x239   :  { %806 = vsyncpa [#allocation4], 1 }

</bundles_post_ra>
